<compile_context>
chip_gen: v7x
topology: tpu7x:2x2x1
jax: 0.10.0
libtpu: 0.0.40
codegen_flags: <defaults>
</compile_context>

<pallas_src>
import functools

import jax
import jax.numpy as jnp
from jax.experimental import pallas as pl
from jax.experimental.pallas import tpu as pltpu

EPS = 1e-5
LANE = 128
MAX_ROWS_PER_TILE = 2048            # 2048 rows x 128 lanes x 3 ch x 4 B = 3 MiB
FAST_PATH_BYTES = 4 * 1024 * 1024   # whole reshaped tensor resident in VMEM
VMEM_LIMIT_BYTES = 48 * 1024 * 1024  # <= v7x's 64 MiB physical VMEM


# --------------------------------------------------------------------------
# Kernels
# --------------------------------------------------------------------------
def _stats_kernel(x_ref, sum_ref, sq_ref, *, rows_total, needs_mask):
    # x_ref:   (C, TR, 128) VMEM input tile (batch dim squeezed)
    # sum_ref: (C, 128) per-core resident accumulator (core dim squeezed)
    # sq_ref:  (C, 128) per-core resident accumulator
    @pl.when((pl.program_id(1) == 0) & (pl.program_id(2) == 0))
    def _init():
        sum_ref[...] = jnp.zeros_like(sum_ref)
        sq_ref[...] = jnp.zeros_like(sq_ref)

    x = x_ref[...]                                   # (C, TR, 128)
    if needs_mask:
        # Ragged last tile: rows >= valid hold garbage (partial boundary
        # block) and must not contribute to the statistics.
        tr = x.shape[1]
        valid = rows_total - pl.program_id(2) * tr
        ridx = jax.lax.broadcasted_iota(jnp.int32, x.shape, 1)
        x = jnp.where(ridx < valid, x, 0.0)

    sum_ref[...] += jnp.sum(x, axis=1)               # sublane reduce -> (C,128)
    sq_ref[...] += jnp.sum(x * x, axis=1)


def _apply_kernel(a_ref, c_ref, x_ref, o_ref):
    # a_ref: (C, C) SMEM folded weights; c_ref: (C,) SMEM folded bias
    # x_ref/o_ref: (C, TR, 128) VMEM tiles (batch dim squeezed)
    # out[o] = sum_i A[o,i] * x[i] + c[o]  -> C scalar-broadcast VPU FMAs/elem
    C = a_ref.shape[0]
    xs = [x_ref[i] for i in range(C)]                # hoisted slab loads
    for o in range(C):                               # C == 3, unrolled
        acc = xs[0] * a_ref[o, 0] + c_ref[o]
        for i in range(1, C):
            acc = acc + xs[i] * a_ref[o, i]
        o_ref[o] = acc


def _fused_kernel(gamma_ref, beta_ref, w_ref, b_ref, x_ref, o_ref, *, inv_count):
    # Fast path: whole (N, C, rows, 128) tensor resident in VMEM.
    # gamma/beta/bias: (C,) SMEM; w: (C, C) SMEM.
    C = w_ref.shape[0]
    scales = []
    shifts = []
    for i in range(C):
        xi = x_ref[:, i]                             # (N, rows, 128)
        s = jnp.sum(xi)
        sq = jnp.sum(xi * xi)
        mean = s * inv_count
        # TODO(synk): E[x^2]-E[x]^2 in f32 can cancel when |mean| >> std.
        var = jnp.maximum(sq * inv_count - mean * mean, 0.0)
        sc = gamma_ref[i] * jax.lax.rsqrt(var + EPS)
        scales.append(sc)
        shifts.append(beta_ref[i] - sc * mean)
    # out[o] = sum_i (W+I)[o,i] * (scale_i*x_i + shift_i) + bias_o
    for o in range(C):
        const = b_ref[o]
        acc = None
        for i in range(C):
            wi = w_ref[o, i] + (1.0 if o == i else 0.0)
            const = const + wi * shifts[i]
            term = x_ref[:, i] * (wi * scales[i])
            acc = term if acc is None else acc + term
        o_ref[:, o] = acc + const


# --------------------------------------------------------------------------
# Wrapper
# --------------------------------------------------------------------------
def model_forward(x, gamma, beta, conv_w, conv_b, *,
                  max_rows=MAX_ROWS_PER_TILE,
                  fast_path_bytes=FAST_PATH_BYTES):
    """x: (N, C, D, H, W) float32.  Returns (N, C, D, H, W) float32."""
    N, C, D, H, W = x.shape
    M = D * H * W

    x = x.astype(jnp.float32)
    gamma = gamma.astype(jnp.float32)
    beta = beta.astype(jnp.float32)
    w = conv_w.reshape(C, C).astype(jnp.float32)     # 1x1x1 kernel squeezed
    b = conv_b.astype(jnp.float32)

    rows = pl.cdiv(M, LANE)
    lane_pad = (M % LANE) != 0
    m_pad = rows * LANE

    # Free contiguous reshape (no transpose).  Only pad when the lane dim is
    # ragged; zeros do not perturb sum / sumsq since we divide by true count.
    x3 = x.reshape(N, C, M)
    if lane_pad:
        x3 = jnp.pad(x3, ((0, 0), (0, 0), (0, m_pad - M)))
    x4 = x3.reshape(N, C, rows, LANE)

    count = float(N * M)                 # true element count (padding excluded)
    total_bytes = N * C * rows * LANE * 4

    if total_bytes <= fast_path_bytes:
        # ---- single fused kernel: one HBM read + one write ----
        out4 = pl.pallas_call(
            functools.partial(_fused_kernel, inv_count=1.0 / count),
            out_shape=jax.ShapeDtypeStruct((N, C, rows, LANE), jnp.float32),
            in_specs=[
                pl.BlockSpec(memory_space=pltpu.MemorySpace.SMEM),  # gamma
                pl.BlockSpec(memory_space=pltpu.MemorySpace.SMEM),  # beta
                pl.BlockSpec(memory_space=pltpu.MemorySpace.SMEM),  # W (C,C)
                pl.BlockSpec(memory_space=pltpu.MemorySpace.SMEM),  # conv bias
                pl.BlockSpec(memory_space=pltpu.MemorySpace.VMEM),  # x (whole)
            ],
            out_specs=pl.BlockSpec(memory_space=pltpu.MemorySpace.VMEM),
            compiler_params=pltpu.CompilerParams(
                vmem_limit_bytes=VMEM_LIMIT_BYTES),
        )(gamma, beta, w, b, x4)
    else:
        # ---- pass 1: per-channel sum / sum-of-squares ----
        if rows <= max_rows:
            tr, n_tiles, needs_mask = rows, 1, False
        else:
            tr = max_rows                               # multiple of 8
            n_tiles = pl.cdiv(rows, tr)
            needs_mask = (rows % tr) != 0               # ragged last tile
        ncore_split = 2 if (N % 2 == 0) else 1          # v7x: one sweep per TC
        n_per_core = N // ncore_split

        sum_out, sq_out = pl.pallas_call(
            functools.partial(_stats_kernel, rows_total=rows,
                              needs_mask=needs_mask),
            out_shape=(
                jax.ShapeDtypeStruct((ncore_split, C, LANE), jnp.float32),
                jax.ShapeDtypeStruct((ncore_split, C, LANE), jnp.float32)),
            grid_spec=pltpu.PrefetchScalarGridSpec(
                num_scalar_prefetch=0,
                grid=(ncore_split, n_per_core, n_tiles),
                in_specs=[pl.BlockSpec(
                    (None, C, tr, LANE),
                    lambda cs, n, t: (cs * n_per_core + n, 0, t, 0))],
                out_specs=(
                    pl.BlockSpec((None, C, LANE), lambda cs, n, t: (cs, 0, 0)),
                    pl.BlockSpec((None, C, LANE), lambda cs, n, t: (cs, 0, 0)),
                ),
            ),
            compiler_params=pltpu.CompilerParams(
                dimension_semantics=("parallel", "arbitrary", "arbitrary"),
                vmem_limit_bytes=VMEM_LIMIT_BYTES),
        )(x4)

        # ---- fold BN + conv + identity into a single affine (tiny 3x3) ----
        s = jnp.sum(sum_out, axis=(0, 2))                      # (C,)
        sq = jnp.sum(sq_out, axis=(0, 2))                      # (C,)
        mean = s / count
        var = jnp.maximum(sq / count - mean * mean, 0.0)       # biased variance
        scale = gamma * jax.lax.rsqrt(var + EPS)
        wi = w + jnp.eye(C, dtype=jnp.float32)
        a_mat = wi * scale[None, :]                            # (C, C)
        c_vec = wi @ (beta - scale * mean) + b                 # (C,)

        # ---- pass 2: out = A @ x + c, lane-dense tiles, fully parallel ----
        out4 = pl.pallas_call(
            _apply_kernel,
            out_shape=jax.ShapeDtypeStruct((N, C, rows, LANE), jnp.float32),
            grid_spec=pltpu.PrefetchScalarGridSpec(
                num_scalar_prefetch=0,
                grid=(N, n_tiles),
                in_specs=[
                    pl.BlockSpec(memory_space=pltpu.MemorySpace.SMEM),  # A
                    pl.BlockSpec(memory_space=pltpu.MemorySpace.SMEM),  # c
                    pl.BlockSpec((None, C, tr, LANE),
                                 lambda n, t: (n, 0, t, 0)),
                ],
                out_specs=pl.BlockSpec((None, C, tr, LANE),
                                       lambda n, t: (n, 0, t, 0)),
            ),
            compiler_params=pltpu.CompilerParams(
                dimension_semantics=("parallel", "parallel"),
                vmem_limit_bytes=VMEM_LIMIT_BYTES),
        )(a_mat, c_vec, x4)

    out3 = out4.reshape(N, C, m_pad)
    if lane_pad:
        out3 = out3[:, :, :M]
    return out3.reshape(N, C, D, H, W)


# --------------------------------------------------------------------------
# Pure-JAX reference for sanity checking.
# --------------------------------------------------------------------------
def _reference(x, gamma, beta, conv_w, conv_b):
    C = x.shape[1]
    mean = jnp.mean(x, axis=(0, 2, 3, 4), keepdims=True)
    var = jnp.mean((x - mean) ** 2, axis=(0, 2, 3, 4), keepdims=True)
    bn = gamma.reshape(1, -1, 1, 1, 1) * (x - mean) / jnp.sqrt(var + EPS) \
        + beta.reshape(1, -1, 1, 1, 1)
    conv = jnp.einsum("oc,ncdhw->nodhw", conv_w.reshape(C, C), bn) \
        + conv_b.reshape(1, -1, 1, 1, 1)
    return conv + bn


if __name__ == "__main__":
    key = jax.random.PRNGKey(0)
    k_x, k_g, k_b, k_w, k_cb, k_x2, k_x3 = jax.random.split(key, 7)

    C = 3
    gamma = 1.0 + 0.1 * jax.random.normal(k_g, (C,), dtype=jnp.float32)
    beta = 0.1 * jax.random.normal(k_b, (C,), dtype=jnp.float32)
    conv_w = 0.2 * jax.random.normal(k_w, (C, C, 1, 1, 1), dtype=jnp.float32)
    conv_b = 0.1 * jax.random.normal(k_cb, (C,), dtype=jnp.float32)

    def check(out, x):
        ref = _reference(x, gamma, beta, conv_w, conv_b)
        err = float(jnp.max(jnp.abs(out - ref)))
        assert out.shape == x.shape, (out.shape, x.shape)
        assert jnp.allclose(out, ref, atol=1e-4, rtol=1e-4), err

    # 1) Primary small case -> fused single-kernel VMEM-resident fast path.
    x = jax.random.normal(k_x, (2, C, 4, 8, 8), dtype=jnp.float32)  # M = 256
    out = jax.block_until_ready(model_forward(x, gamma, beta, conv_w, conv_b))
    check(out, x)

    # 2) Same input through the two-pass pipelined path (core-split stats).
    out2 = jax.block_until_ready(
        model_forward(x, gamma, beta, conv_w, conv_b, fast_path_bytes=0))
    check(out2, x)

    # 3) Multi-tile + ragged last tile (sublane masking in the stats pass).
    x_r = jax.random.normal(k_x2, (2, C, 10, 16, 16), dtype=jnp.float32)
    out3 = jax.block_until_ready(
        model_forward(x_r, gamma, beta, conv_w, conv_b,
                      fast_path_bytes=0, max_rows=8))
    check(out3, x_r)

    # 4) D*H*W not a multiple of 128 -> zero-pad fallback path.
    x_p = jax.random.normal(k_x3, (2, C, 3, 5, 7), dtype=jnp.float32)
    out4 = jax.block_until_ready(
        model_forward(x_p, gamma, beta, conv_w, conv_b, fast_path_bytes=0))
    check(out4, x_p)

    print("KERNEL_OK")
</pallas_src>

<mosaic_0001>
module attributes {stable_mosaic.version = 11 : i64} {
  func.func @_fused_kernel(%arg0: memref<3xf32, #tpu.memory_space<smem>>, %arg1: memref<3xf32, #tpu.memory_space<smem>>, %arg2: memref<3x3xf32, #tpu.memory_space<smem>>, %arg3: memref<3xf32, #tpu.memory_space<smem>>, %arg4: memref<2x3x2x128xf32, #tpu.memory_space<vmem>>, %arg5: memref<2x3x2x128xf32, #tpu.memory_space<vmem>>) attributes {dimension_semantics = [], scalar_prefetch = 0 : i64, scratch_operands = 0 : i64, tpu.core_type = #tpu.core_type<tc>} {
    %c0 = arith.constant 0 : index
    %c0_0 = arith.constant 0 : index
    %c0_1 = arith.constant 0 : index
    %c0_2 = arith.constant 0 : index
    %0 = vector.load %arg4[%c0, %c0_0, %c0_1, %c0_2] : memref<2x3x2x128xf32, #tpu.memory_space<vmem>>, vector<2x1x2x128xf32>
    %1 = vector.shape_cast %0 : vector<2x1x2x128xf32> to vector<2x2x128xf32>
    %2 = vector.shape_cast %1 : vector<2x2x128xf32> to vector<1x2x2x128xf32>
    %cst = arith.constant dense<0.000000e+00> : vector<1xf32>
    %3 = vector.multi_reduction <add>, %2, %cst [1, 2, 3] : vector<1x2x2x128xf32> to vector<1xf32>
    %4 = vector.shape_cast %3 : vector<1xf32> to vector<1x1x1x1xf32>
    %5 = vector.extract %4[0, 0, 0, 0] : f32 from vector<1x1x1x1xf32>
    %6 = arith.mulf %1, %1 : vector<2x2x128xf32>
    %7 = vector.shape_cast %6 : vector<2x2x128xf32> to vector<1x2x2x128xf32>
    %cst_3 = arith.constant dense<0.000000e+00> : vector<1xf32>
    %8 = vector.multi_reduction <add>, %7, %cst_3 [1, 2, 3] : vector<1x2x2x128xf32> to vector<1xf32>
    %9 = vector.shape_cast %8 : vector<1xf32> to vector<1x1x1x1xf32>
    %10 = vector.extract %9[0, 0, 0, 0] : f32 from vector<1x1x1x1xf32>
    %cst_4 = arith.constant 0.001953125 : f32
    %11 = arith.mulf %5, %cst_4 : f32
    %cst_5 = arith.constant 0.001953125 : f32
    %12 = arith.mulf %10, %cst_5 : f32
    %13 = arith.mulf %11, %11 : f32
    %14 = arith.subf %12, %13 : f32
    %cst_6 = arith.constant 0.000000e+00 : f32
    %15 = arith.maximumf %14, %cst_6 : f32
    %c0_7 = arith.constant 0 : index
    %16 = memref.load %arg0[%c0_7] : memref<3xf32, #tpu.memory_space<smem>>
    %cst_8 = arith.constant 9.99999974E-6 : f32
    %17 = arith.addf %15, %cst_8 : f32
    %18 = math.rsqrt %17 : f32
    %19 = arith.mulf %16, %18 : f32
    %c0_9 = arith.constant 0 : index
    %20 = memref.load %arg1[%c0_9] : memref<3xf32, #tpu.memory_space<smem>>
    %21 = arith.mulf %19, %11 : f32
    %22 = arith.subf %20, %21 : f32
    %c0_10 = arith.constant 0 : index
    %c1 = arith.constant 1 : index
    %c0_11 = arith.constant 0 : index
    %c0_12 = arith.constant 0 : index
    %23 = vector.load %arg4[%c0_10, %c1, %c0_11, %c0_12] : memref<2x3x2x128xf32, #tpu.memory_space<vmem>>, vector<2x1x2x128xf32>
    %24 = vector.shape_cast %23 : vector<2x1x2x128xf32> to vector<2x2x128xf32>
    %25 = vector.shape_cast %24 : vector<2x2x128xf32> to vector<1x2x2x128xf32>
    %cst_13 = arith.constant dense<0.000000e+00> : vector<1xf32>
    %26 = vector.multi_reduction <add>, %25, %cst_13 [1, 2, 3] : vector<1x2x2x128xf32> to vector<1xf32>
    %27 = vector.shape_cast %26 : vector<1xf32> to vector<1x1x1x1xf32>
    %28 = vector.extract %27[0, 0, 0, 0] : f32 from vector<1x1x1x1xf32>
    %29 = arith.mulf %24, %24 : vector<2x2x128xf32>
    %30 = vector.shape_cast %29 : vector<2x2x128xf32> to vector<1x2x2x128xf32>
    %cst_14 = arith.constant dense<0.000000e+00> : vector<1xf32>
    %31 = vector.multi_reduction <add>, %30, %cst_14 [1, 2, 3] : vector<1x2x2x128xf32> to vector<1xf32>
    %32 = vector.shape_cast %31 : vector<1xf32> to vector<1x1x1x1xf32>
    %33 = vector.extract %32[0, 0, 0, 0] : f32 from vector<1x1x1x1xf32>
    %cst_15 = arith.constant 0.001953125 : f32
    %34 = arith.mulf %28, %cst_15 : f32
    %cst_16 = arith.constant 0.001953125 : f32
    %35 = arith.mulf %33, %cst_16 : f32
    %36 = arith.mulf %34, %34 : f32
    %37 = arith.subf %35, %36 : f32
    %cst_17 = arith.constant 0.000000e+00 : f32
    %38 = arith.maximumf %37, %cst_17 : f32
    %c1_18 = arith.constant 1 : index
    %39 = memref.load %arg0[%c1_18] : memref<3xf32, #tpu.memory_space<smem>>
    %cst_19 = arith.constant 9.99999974E-6 : f32
    %40 = arith.addf %38, %cst_19 : f32
    %41 = math.rsqrt %40 : f32
    %42 = arith.mulf %39, %41 : f32
    %c1_20 = arith.constant 1 : index
    %43 = memref.load %arg1[%c1_20] : memref<3xf32, #tpu.memory_space<smem>>
    %44 = arith.mulf %42, %34 : f32
    %45 = arith.subf %43, %44 : f32
    %c0_21 = arith.constant 0 : index
    %c2 = arith.constant 2 : index
    %c0_22 = arith.constant 0 : index
    %c0_23 = arith.constant 0 : index
    %46 = vector.load %arg4[%c0_21, %c2, %c0_22, %c0_23] : memref<2x3x2x128xf32, #tpu.memory_space<vmem>>, vector<2x1x2x128xf32>
    %47 = vector.shape_cast %46 : vector<2x1x2x128xf32> to vector<2x2x128xf32>
    %48 = vector.shape_cast %47 : vector<2x2x128xf32> to vector<1x2x2x128xf32>
    %cst_24 = arith.constant dense<0.000000e+00> : vector<1xf32>
    %49 = vector.multi_reduction <add>, %48, %cst_24 [1, 2, 3] : vector<1x2x2x128xf32> to vector<1xf32>
    %50 = vector.shape_cast %49 : vector<1xf32> to vector<1x1x1x1xf32>
    %51 = vector.extract %50[0, 0, 0, 0] : f32 from vector<1x1x1x1xf32>
    %52 = arith.mulf %47, %47 : vector<2x2x128xf32>
    %53 = vector.shape_cast %52 : vector<2x2x128xf32> to vector<1x2x2x128xf32>
    %cst_25 = arith.constant dense<0.000000e+00> : vector<1xf32>
    %54 = vector.multi_reduction <add>, %53, %cst_25 [1, 2, 3] : vector<1x2x2x128xf32> to vector<1xf32>
    %55 = vector.shape_cast %54 : vector<1xf32> to vector<1x1x1x1xf32>
    %56 = vector.extract %55[0, 0, 0, 0] : f32 from vector<1x1x1x1xf32>
    %cst_26 = arith.constant 0.001953125 : f32
    %57 = arith.mulf %51, %cst_26 : f32
    %cst_27 = arith.constant 0.001953125 : f32
    %58 = arith.mulf %56, %cst_27 : f32
    %59 = arith.mulf %57, %57 : f32
    %60 = arith.subf %58, %59 : f32
    %cst_28 = arith.constant 0.000000e+00 : f32
    %61 = arith.maximumf %60, %cst_28 : f32
    %c2_29 = arith.constant 2 : index
    %62 = memref.load %arg0[%c2_29] : memref<3xf32, #tpu.memory_space<smem>>
    %cst_30 = arith.constant 9.99999974E-6 : f32
    %63 = arith.addf %61, %cst_30 : f32
    %64 = math.rsqrt %63 : f32
    %65 = arith.mulf %62, %64 : f32
    %c2_31 = arith.constant 2 : index
    %66 = memref.load %arg1[%c2_31] : memref<3xf32, #tpu.memory_space<smem>>
    %67 = arith.mulf %65, %57 : f32
    %68 = arith.subf %66, %67 : f32
    %c0_32 = arith.constant 0 : index
    %69 = memref.load %arg3[%c0_32] : memref<3xf32, #tpu.memory_space<smem>>
    %c0_33 = arith.constant 0 : index
    %c0_34 = arith.constant 0 : index
    %70 = memref.load %arg2[%c0_33, %c0_34] : memref<3x3xf32, #tpu.memory_space<smem>>
    %cst_35 = arith.constant 1.000000e+00 : f32
    %71 = arith.addf %70, %cst_35 : f32
    %72 = arith.mulf %71, %22 : f32
    %73 = arith.addf %69, %72 : f32
    %c0_36 = arith.constant 0 : index
    %c0_37 = arith.constant 0 : index
    %c0_38 = arith.constant 0 : index
    %c0_39 = arith.constant 0 : index
    %74 = vector.load %arg4[%c0_36, %c0_37, %c0_38, %c0_39] : memref<2x3x2x128xf32, #tpu.memory_space<vmem>>, vector<2x1x2x128xf32>
    %75 = vector.shape_cast %74 : vector<2x1x2x128xf32> to vector<2x2x128xf32>
    %76 = arith.mulf %71, %19 : f32
    %77 = vector.broadcast %76 : f32 to vector<2x2x128xf32>
    %78 = arith.mulf %75, %77 : vector<2x2x128xf32>
    %c0_40 = arith.constant 0 : index
    %c1_41 = arith.constant 1 : index
    %79 = memref.load %arg2[%c0_40, %c1_41] : memref<3x3xf32, #tpu.memory_space<smem>>
    %cst_42 = arith.constant 0.000000e+00 : f32
    %80 = arith.addf %79, %cst_42 : f32
    %81 = arith.mulf %80, %45 : f32
    %82 = arith.addf %73, %81 : f32
    %c0_43 = arith.constant 0 : index
    %c1_44 = arith.constant 1 : index
    %c0_45 = arith.constant 0 : index
    %c0_46 = arith.constant 0 : index
    %83 = vector.load %arg4[%c0_43, %c1_44, %c0_45, %c0_46] : memref<2x3x2x128xf32, #tpu.memory_space<vmem>>, vector<2x1x2x128xf32>
    %84 = vector.shape_cast %83 : vector<2x1x2x128xf32> to vector<2x2x128xf32>
    %85 = arith.mulf %80, %42 : f32
    %86 = vector.broadcast %85 : f32 to vector<2x2x128xf32>
    %87 = arith.mulf %84, %86 : vector<2x2x128xf32>
    %88 = arith.addf %78, %87 : vector<2x2x128xf32>
    %c0_47 = arith.constant 0 : index
    %c2_48 = arith.constant 2 : index
    %89 = memref.load %arg2[%c0_47, %c2_48] : memref<3x3xf32, #tpu.memory_space<smem>>
    %cst_49 = arith.constant 0.000000e+00 : f32
    %90 = arith.addf %89, %cst_49 : f32
    %91 = arith.mulf %90, %68 : f32
    %92 = arith.addf %82, %91 : f32
    %c0_50 = arith.constant 0 : index
    %c2_51 = arith.constant 2 : index
    %c0_52 = arith.constant 0 : index
    %c0_53 = arith.constant 0 : index
    %93 = vector.load %arg4[%c0_50, %c2_51, %c0_52, %c0_53] : memref<2x3x2x128xf32, #tpu.memory_space<vmem>>, vector<2x1x2x128xf32>
    %94 = vector.shape_cast %93 : vector<2x1x2x128xf32> to vector<2x2x128xf32>
    %95 = arith.mulf %90, %65 : f32
    %96 = vector.broadcast %95 : f32 to vector<2x2x128xf32>
    %97 = arith.mulf %94, %96 : vector<2x2x128xf32>
    %98 = arith.addf %88, %97 : vector<2x2x128xf32>
    %99 = vector.broadcast %92 : f32 to vector<2x2x128xf32>
    %100 = arith.addf %98, %99 : vector<2x2x128xf32>
    %c0_54 = arith.constant 0 : index
    %c0_55 = arith.constant 0 : index
    %c0_56 = arith.constant 0 : index
    %c0_57 = arith.constant 0 : index
    %101 = vector.load %arg5[%c0_54, %c0_55, %c0_56, %c0_57] : memref<2x3x2x128xf32, #tpu.memory_space<vmem>>, vector<2x1x2x128xf32>
    %102 = vector.shape_cast %101 : vector<2x1x2x128xf32> to vector<2x2x128xf32>
    %103 = vector.shape_cast %100 : vector<2x2x128xf32> to vector<2x1x2x128xf32>
    tpu.vector_store %arg5[%c0_54, %c0_55, %c0_56, %c0_57], %103 {strides = array<i32>} : memref<2x3x2x128xf32, #tpu.memory_space<vmem>>, vector<2x1x2x128xf32>,
    %c1_58 = arith.constant 1 : index
    %104 = memref.load %arg3[%c1_58] : memref<3xf32, #tpu.memory_space<smem>>
    %c1_59 = arith.constant 1 : index
    %c0_60 = arith.constant 0 : index
    %105 = memref.load %arg2[%c1_59, %c0_60] : memref<3x3xf32, #tpu.memory_space<smem>>
    %cst_61 = arith.constant 0.000000e+00 : f32
    %106 = arith.addf %105, %cst_61 : f32
    %107 = arith.mulf %106, %22 : f32
    %108 = arith.addf %104, %107 : f32
    %c0_62 = arith.constant 0 : index
    %c0_63 = arith.constant 0 : index
    %c0_64 = arith.constant 0 : index
    %c0_65 = arith.constant 0 : index
    %109 = vector.load %arg4[%c0_62, %c0_63, %c0_64, %c0_65] : memref<2x3x2x128xf32, #tpu.memory_space<vmem>>, vector<2x1x2x128xf32>
    %110 = vector.shape_cast %109 : vector<2x1x2x128xf32> to vector<2x2x128xf32>
    %111 = arith.mulf %106, %19 : f32
    %112 = vector.broadcast %111 : f32 to vector<2x2x128xf32>
    %113 = arith.mulf %110, %112 : vector<2x2x128xf32>
    %c1_66 = arith.constant 1 : index
    %c1_67 = arith.constant 1 : index
    %114 = memref.load %arg2[%c1_66, %c1_67] : memref<3x3xf32, #tpu.memory_space<smem>>
    %cst_68 = arith.constant 1.000000e+00 : f32
    %115 = arith.addf %114, %cst_68 : f32
    %116 = arith.mulf %115, %45 : f32
    %117 = arith.addf %108, %116 : f32
    %c0_69 = arith.constant 0 : index
    %c1_70 = arith.constant 1 : index
    %c0_71 = arith.constant 0 : index
    %c0_72 = arith.constant 0 : index
    %118 = vector.load %arg4[%c0_69, %c1_70, %c0_71, %c0_72] : memref<2x3x2x128xf32, #tpu.memory_space<vmem>>, vector<2x1x2x128xf32>
    %119 = vector.shape_cast %118 : vector<2x1x2x128xf32> to vector<2x2x128xf32>
    %120 = arith.mulf %115, %42 : f32
    %121 = vector.broadcast %120 : f32 to vector<2x2x128xf32>
    %122 = arith.mulf %119, %121 : vector<2x2x128xf32>
    %123 = arith.addf %113, %122 : vector<2x2x128xf32>
    %c1_73 = arith.constant 1 : index
    %c2_74 = arith.constant 2 : index
    %124 = memref.load %arg2[%c1_73, %c2_74] : memref<3x3xf32, #tpu.memory_space<smem>>
    %cst_75 = arith.constant 0.000000e+00 : f32
    %125 = arith.addf %124, %cst_75 : f32
    %126 = arith.mulf %125, %68 : f32
    %127 = arith.addf %117, %126 : f32
    %c0_76 = arith.constant 0 : index
    %c2_77 = arith.constant 2 : index
    %c0_78 = arith.constant 0 : index
    %c0_79 = arith.constant 0 : index
    %128 = vector.load %arg4[%c0_76, %c2_77, %c0_78, %c0_79] : memref<2x3x2x128xf32, #tpu.memory_space<vmem>>, vector<2x1x2x128xf32>
    %129 = vector.shape_cast %128 : vector<2x1x2x128xf32> to vector<2x2x128xf32>
    %130 = arith.mulf %125, %65 : f32
    %131 = vector.broadcast %130 : f32 to vector<2x2x128xf32>
    %132 = arith.mulf %129, %131 : vector<2x2x128xf32>
    %133 = arith.addf %123, %132 : vector<2x2x128xf32>
    %134 = vector.broadcast %127 : f32 to vector<2x2x128xf32>
    %135 = arith.addf %133, %134 : vector<2x2x128xf32>
    %c0_80 = arith.constant 0 : index
    %c1_81 = arith.constant 1 : index
    %c0_82 = arith.constant 0 : index
    %c0_83 = arith.constant 0 : index
    %136 = vector.load %arg5[%c0_80, %c1_81, %c0_82, %c0_83] : memref<2x3x2x128xf32, #tpu.memory_space<vmem>>, vector<2x1x2x128xf32>
    %137 = vector.shape_cast %136 : vector<2x1x2x128xf32> to vector<2x2x128xf32>
    %138 = vector.shape_cast %135 : vector<2x2x128xf32> to vector<2x1x2x128xf32>
    tpu.vector_store %arg5[%c0_80, %c1_81, %c0_82, %c0_83], %138 {strides = array<i32>} : memref<2x3x2x128xf32, #tpu.memory_space<vmem>>, vector<2x1x2x128xf32>,
    %c2_84 = arith.constant 2 : index
    %139 = memref.load %arg3[%c2_84] : memref<3xf32, #tpu.memory_space<smem>>
    %c2_85 = arith.constant 2 : index
    %c0_86 = arith.constant 0 : index
    %140 = memref.load %arg2[%c2_85, %c0_86] : memref<3x3xf32, #tpu.memory_space<smem>>
    %cst_87 = arith.constant 0.000000e+00 : f32
    %141 = arith.addf %140, %cst_87 : f32
    %142 = arith.mulf %141, %22 : f32
    %143 = arith.addf %139, %142 : f32
    %c0_88 = arith.constant 0 : index
    %c0_89 = arith.constant 0 : index
    %c0_90 = arith.constant 0 : index
    %c0_91 = arith.constant 0 : index
    %144 = vector.load %arg4[%c0_88, %c0_89, %c0_90, %c0_91] : memref<2x3x2x128xf32, #tpu.memory_space<vmem>>, vector<2x1x2x128xf32>
    %145 = vector.shape_cast %144 : vector<2x1x2x128xf32> to vector<2x2x128xf32>
    %146 = arith.mulf %141, %19 : f32
    %147 = vector.broadcast %146 : f32 to vector<2x2x128xf32>
    %148 = arith.mulf %145, %147 : vector<2x2x128xf32>
    %c2_92 = arith.constant 2 : index
    %c1_93 = arith.constant 1 : index
    %149 = memref.load %arg2[%c2_92, %c1_93] : memref<3x3xf32, #tpu.memory_space<smem>>
    %cst_94 = arith.constant 0.000000e+00 : f32
    %150 = arith.addf %149, %cst_94 : f32
    %151 = arith.mulf %150, %45 : f32
    %152 = arith.addf %143, %151 : f32
    %c0_95 = arith.constant 0 : index
    %c1_96 = arith.constant 1 : index
    %c0_97 = arith.constant 0 : index
    %c0_98 = arith.constant 0 : index
    %153 = vector.load %arg4[%c0_95, %c1_96, %c0_97, %c0_98] : memref<2x3x2x128xf32, #tpu.memory_space<vmem>>, vector<2x1x2x128xf32>
    %154 = vector.shape_cast %153 : vector<2x1x2x128xf32> to vector<2x2x128xf32>
    %155 = arith.mulf %150, %42 : f32
    %156 = vector.broadcast %155 : f32 to vector<2x2x128xf32>
    %157 = arith.mulf %154, %156 : vector<2x2x128xf32>
    %158 = arith.addf %148, %157 : vector<2x2x128xf32>
    %c2_99 = arith.constant 2 : index
    %c2_100 = arith.constant 2 : index
    %159 = memref.load %arg2[%c2_99, %c2_100] : memref<3x3xf32, #tpu.memory_space<smem>>
    %cst_101 = arith.constant 1.000000e+00 : f32
    %160 = arith.addf %159, %cst_101 : f32
    %161 = arith.mulf %160, %68 : f32
    %162 = arith.addf %152, %161 : f32
    %c0_102 = arith.constant 0 : index
    %c2_103 = arith.constant 2 : index
    %c0_104 = arith.constant 0 : index
    %c0_105 = arith.constant 0 : index
    %163 = vector.load %arg4[%c0_102, %c2_103, %c0_104, %c0_105] : memref<2x3x2x128xf32, #tpu.memory_space<vmem>>, vector<2x1x2x128xf32>
    %164 = vector.shape_cast %163 : vector<2x1x2x128xf32> to vector<2x2x128xf32>
    %165 = arith.mulf %160, %65 : f32
    %166 = vector.broadcast %165 : f32 to vector<2x2x128xf32>
    %167 = arith.mulf %164, %166 : vector<2x2x128xf32>
    %168 = arith.addf %158, %167 : vector<2x2x128xf32>
    %169 = vector.broadcast %162 : f32 to vector<2x2x128xf32>
    %170 = arith.addf %168, %169 : vector<2x2x128xf32>
    %c0_106 = arith.constant 0 : index
    %c2_107 = arith.constant 2 : index
    %c0_108 = arith.constant 0 : index
    %c0_109 = arith.constant 0 : index
    %171 = vector.load %arg5[%c0_106, %c2_107, %c0_108, %c0_109] : memref<2x3x2x128xf32, #tpu.memory_space<vmem>>, vector<2x1x2x128xf32>
    %172 = vector.shape_cast %171 : vector<2x1x2x128xf32> to vector<2x2x128xf32>
    %173 = vector.shape_cast %170 : vector<2x2x128xf32> to vector<2x1x2x128xf32>
    tpu.vector_store %arg5[%c0_106, %c2_107, %c0_108, %c0_109], %173 {strides = array<i32>} : memref<2x3x2x128xf32, #tpu.memory_space<vmem>>, vector<2x1x2x128xf32>,
    return
  }
}

</mosaic_0001>

<bundles_post_ra>
// kernel: tpu_custom_call.1
= control target key start
LH: loop header
LB: loop body
LE: loop exit
PB: predicated region body
PF: predicated region fallthrough
CT: control target
= control target key end

     0   :  { %10 = vsyncpa [#allocation4], 0  ;;  %s750_s0 = inlined_call_operand.hbm [shape: f32[3], index: 0, kind: input, shape index: {}]   ;;  %s751_s1 = inlined_call_operand.vmem [shape: f32[3], index: 1, kind: input, shape index: {}]   ;;  %s752_s2 = inlined_call_operand.hbm [shape: f32[3,3], index: 2, kind: input, shape index: {}]   ;;  %s753_s3 = inlined_call_operand.vmem [shape: f32[3], index: 3, kind: input, shape index: {}]   ;;  %s754_s4 = inlined_call_operand.vmem [shape: f32[2,3,2,128], index: 4, kind: input, shape index: {}]   ;;  %s755_s5 = inlined_call_operand.hbm [shape: f32[2,3,2,128], index: 5, kind: output, shape index: {}]  }
   0x1   :  { %11 = vsyncpa [#allocation5], 0 }
   0x2   :  { %12 = vsyncpa [#allocation8], 0 }
   0x3   :  { %13 = vsyncpa [#allocation10], 0 }
   0x4   :  { %14 = vsyncpa [#allocation3], 0  ;;  %s29_s20 = sshll.u32 %s751_s1, 4  ;;  %s389_s23 = scalar_lea.hbm %s750_s0, 16  ;;  %s30_s20 = int_to_ptr.vmem [resolvable:$true] %s29_s20 }
   0x5   :  { %p390_p0 = scmp.ne.s32.totalorder %s750_s0, %s389_s23  ;;  %p393_p1 = scmp.lt.u32.totalorder %s389_s23, %s750_s0 }
   0x7   :  { %p395_p2 = pnand %p393_p1, %p390_p0 }
   0x9   :  { %398 = shalt.err (!%p395_p2)
}
   0xa   :  { %s465_s28 = smov [#allocation2]   ;;  %s399_s1 = scalar_lea.vmem %s30_s20, 16 }
   0xb   :  { %22 = dma.hbm_to_smem %s750_s0, 16, %s465_s28, [#allocation4]  }
   0xc   :  { %p400_p3 = scmp.ne.s32.totalorder %s30_s20, %s399_s1  ;;  %p404_p4 = scmp.lt.s32.totalorder %s30_s20, %s30_s20 }
   0xd   :  { %p405_p5 = scmp.lt.s32.totalorder %s399_s1, %s399_s1 }
   0xf   :  { %p406_p6 = por %p405_p5, %p404_p4 }
  0x11   :  { %p407_p7 = pnand %p406_p6, %p400_p3 }
  0x13   :  { %410 = shalt.err (!%p407_p7)
}
  0x14   :  { %s466_s6 = smov [#allocation6]   ;;  %s47_s9 = sshll.u32 %s753_s3, 4  ;;  %s48_s9 = int_to_ptr.vmem [resolvable:$true] %s47_s9 }
  0x15   :  { %32 = dma.vmem_to_smem %s30_s20, 16, %s466_s6, [#allocation5]  }
  0x16   :  { %s411_s12 = scalar_lea.hbm %s752_s2, 64 }
  0x17   :  { %p412_p8 = scmp.ne.s32.totalorder %s752_s2, %s411_s12  ;;  %p415_p9 = scmp.lt.u32.totalorder %s411_s12, %s752_s2 }
  0x19   :  { %p417_p10 = pnand %p415_p9, %p412_p8 }
  0x1b   :  { %420 = shalt.err (!%p417_p10)
}
  0x1c   :  { %s467_s16 = smov [#allocation7]   ;;  %s421_s3 = scalar_lea.vmem %s48_s9, 16 }
  0x1d   :  { %40 = dma.hbm_to_smem %s752_s2, 64, %s467_s16, [#allocation8]  }
  0x1e   :  { %p422_p11 = scmp.ne.s32.totalorder %s48_s9, %s421_s3  ;;  %p426_p12 = scmp.lt.s32.totalorder %s48_s9, %s48_s9 }
  0x1f   :  { %p427_p13 = scmp.lt.s32.totalorder %s421_s3, %s421_s3 }
  0x21   :  { %p428_p0 = por %p427_p13, %p426_p12 }
  0x23   :  { %p429_p1 = pnand %p428_p0, %p422_p11 }
  0x25   :  { %432 = shalt.err (!%p429_p1)
}
  0x26   :  { %s468_s19 = smov [#allocation9]  }
  0x27   :  { %50 = dma.vmem_to_smem %s48_s9, 16, %s468_s19, [#allocation10]  }
  0x28   :  { %455 = dma.done.wait [#allocation4], 16  }
  0x29   :  { %456 = vsyncadd [#allocation4], 4294967280 }
  0x2a   :  { %457 = dma.done.wait [#allocation5], 16  }
  0x2b   :  { %458 = vsyncadd [#allocation5], 4294967280 }
  0x2c   :  { %459 = dma.done.wait [#allocation8], 64  }
  0x2d   :  { %460 = vsyncadd [#allocation8], 4294967232 }
  0x2e   :  { %461 = dma.done.wait [#allocation10], 16  }
  0x2f   :  { %462 = vsyncadd [#allocation10], 4294967280 }
  0x30   :  { %65 = sfence }
  0x31   :  { %v536_v0 = vld [vmem:[%s754_s4] sm:$0x3]  ;;  %v541_v1 = vld [vmem:[%s754_s4 + $0x6] sm:$0x3]  ;;  %vm68_vm0 = vcmask 1041408   ;;  %s469_s11 = smov 0.0  }
  0x32   :  { %v69_v2 = vsel %vm68_vm0, %v536_v0, 0.0  ;;  %v70_v3 = vsel %vm68_vm0, %v541_v1, 0.0  ;;  %v81_v4 = vmul.f32 %v536_v0, %v536_v0  ;;  %v82_v5 = vmul.f32 %v541_v1, %v541_v1  ;;  %v554_v6 = vld [vmem:[%s754_s4 + $0x2] sm:$0x3]  ;;  %v559_v7 = vld [vmem:[%s754_s4 + $0x8] sm:$0x3] }
  0x33   :  { %v71_v8 = vadd.f32 %v70_v3, %v69_v2  ;;  %v112_v9 = vsel %vm68_vm0, %v554_v6, 0.0  ;;  %v113_v10 = vsel %vm68_vm0, %v559_v7, 0.0  ;;  %v124_v11 = vmul.f32 %v554_v6, %v554_v6  ;;  %v570_v12 = vld [vmem:[%s754_s4 + $0x4] sm:$0x3]  ;;  %v575_v13 = vld [vmem:[%s754_s4 + $0xa] sm:$0x3] }
  0x34   :  { %v83_v14 = vsel %vm68_vm0, %v81_v4, 0.0  ;;  %v84_v15 = vsel %vm68_vm0, %v82_v5, 0.0  ;;  %v114_v16 = vadd.f32 %v113_v10, %v112_v9  ;;  %v125_v17 = vmul.f32 %v559_v7, %v559_v7  ;;  %s100_s20 = sld [smem:[#allocation2]]  ;;  %s614_s28 = sld [smem:[#allocation7 + $0x81]] }
  0x35   :  { %72 = vadd.xlane.f32.xlu0 %v71_v8  ;;  %v85_v18 = vadd.f32 %v84_v15, %v83_v14  ;;  %v126_v19 = vsel %vm68_vm0, %v124_v11, 0.0  ;;  %v155_v20 = vsel %vm68_vm0, %v570_v12, 0.0  ;;  %v156_v22 = vsel %vm68_vm0, %v575_v13, 0.0  ;;  %s196_s21 = sld [smem:[#allocation7]]  ;;  %s333_s30 = sld [smem:[#allocation2 + $0x1]] }
  0x36   :  { %115 = vadd.xlane.f32.xlu1 %v114_v16  ;;  %v127_v21 = vsel %vm68_vm0, %v125_v17, 0.0  ;;  %v167_v23 = vmul.f32 %v570_v12, %v570_v12  ;;  %v168_v24 = vmul.f32 %v575_v13, %v575_v13  ;;  %v157_v28 = vadd.f32 %v156_v22, %v155_v20  ;;  %s106_s23 = sld [smem:[#allocation6]]  ;;  %v235_v20 = vld [vmem:[%s754_s4 + $0x6] sm:$0x3]  ;;  %v275_v22 = vld [vmem:[%s754_s4] sm:$0x3] }
  0x37   :  { %v128_v25 = vadd.f32 %v127_v21, %v126_v19  ;;  %s608_s24 = sld [smem:[#allocation7 + $0x80]]  ;;  %v234_v19 = vld [vmem:[%s754_s4] sm:$0x3] }
  0x38   :  { %v169_v26 = vsel %vm68_vm0, %v167_v23, 0.0  ;;  %v170_v27 = vsel %vm68_vm0, %v168_v24, 0.0  ;;  %s610_s25 = sld [smem:[#allocation7 + $0x100]] }
  0x39   :  { %86 = vadd.xlane.f32.xlu0 %v85_v18  ;;  %v171_v29 = vadd.f32 %v170_v27, %v169_v26  ;;  %s616_s29 = sld [smem:[#allocation9]]  ;;  %v344_v26 = vld [vmem:[%s754_s4 + $0x2] sm:$0x3]  ;;  %v345_v27 = vld [vmem:[%s754_s4 + $0x8] sm:$0x3] }
  0x3a   :  { %129 = vadd.xlane.f32.xlu1 %v128_v25  ;;  %v276_v25 = vld [vmem:[%s754_s4 + $0x6] sm:$0x3] }
  0x3b   :  { %s197_s27 = sadd.f32 1.0, %s196_s21 }
  0x3d   :  { %158 = vadd.xlane.f32.xlu0 %v157_v28 }
  0x3e   :  { %172 = vadd.xlane.f32.xlu1 %v171_v29 }
  0xc2   :  { %v73_v30 = vpop.xlane.xlu0 %72 }
  0xc3   :  { %v74_v31 = vrot.slane %v73_v30, 4  ;;  %v116_v44 = vpop.xlane.xlu1 %115 }
  0xc4   :  { %v117_v46 = vrot.slane %v116_v44, 4 }
  0xc5   :  { %v75_v32 = vadd.f32 %v74_v31, %v73_v30  ;;  %v352_v31 = vld [vmem:[%s754_s4 + $0x2] sm:$0x3] }
  0xc6   :  { %v87_v33 = vpop.xlane.xlu0 %86  ;;  %v118_v48 = vadd.f32 %v117_v46, %v116_v44 }
  0xc7   :  { %v76_v34 = vrot.slane %v75_v32, 2  ;;  %v88_v35 = vrot.slane %v87_v33, 4  ;;  %v130_v45 = vpop.xlane.xlu1 %129 }
  0xc8   :  { %v131_v47 = vrot.slane %v130_v45, 4  ;;  %v119_v50 = vrot.slane %v118_v48, 2 }
  0xc9   :  { %v89_v36 = vadd.f32 %v88_v35, %v87_v33  ;;  %v77_v37 = vadd.f32 %v76_v34, %v75_v32  ;;  %v353_v32 = vld [vmem:[%s754_s4 + $0x8] sm:$0x3] }
  0xca   :  { %v132_v49 = vadd.f32 %v131_v47, %v130_v45  ;;  %v120_v53 = vadd.f32 %v119_v50, %v118_v48  ;;  %v159_v60 = vpop.xlane.xlu0 %158  ;;  %v347_v48 = vld [vmem:[%s754_s4 + $0x4] sm:$0x3] }
  0xcb   :  { %v90_v38 = vrot.slane %v89_v36, 2  ;;  %v78_v39 = vrot.slane %v77_v37, 1  ;;  %v173_v61 = vpop.xlane.xlu1 %172  ;;  %v160_v62 = vrot.slane %v159_v60, 4 }
  0xcc   :  { %v133_v52 = vrot.slane %v132_v49, 2  ;;  %v121_v55 = vrot.slane %v120_v53, 1  ;;  %v174_v63 = vrot.slane %v173_v61, 4 }
  0xcd   :  { %v79_v40 = vadd.f32 %v78_v39, %v77_v37  ;;  %v91_v41 = vadd.f32 %v90_v38, %v89_v36  ;;  %v161_v2 = vadd.f32 %v160_v62, %v159_v60 }
  0xce   :  { %v134_v54 = vadd.f32 %v133_v52, %v132_v49  ;;  %v122_v58 = vadd.f32 %v121_v55, %v120_v53  ;;  %v175_v3 = vadd.f32 %v174_v63, %v173_v61  ;;  %v348_v49 = vld [vmem:[%s754_s4 + $0xa] sm:$0x3] }
  0xcf   :  { %357 = vpush %v79_v40  ;;  %v92_v42 = vrot.slane %v91_v41, 1  ;;  %v162_v4 = vrot.slane %v161_v2, 2  ;;  %v356_v52 = vld [vmem:[%s754_s4 + $0xa] sm:$0x3] }
  0xd0   :  { %v135_v56 = vrot.slane %v134_v54, 1  ;;  %v176_v8 = vrot.slane %v175_v3, 2 }
  0xd1   :  { %v93_v43 = vadd.f32 %v92_v42, %v91_v41  ;;  %v163_v9 = vadd.f32 %v162_v4, %v161_v2 }
  0xd2   :  { %v136_v59 = vadd.f32 %v135_v56, %v134_v54  ;;  %v177_v10 = vadd.f32 %v176_v8, %v175_v3 }
  0xd3   :  { %359 = vpush %v93_v43  ;;  %v164_v11 = vrot.slane %v163_v9, 1 }
  0xd4   :  { %v178_v14 = vrot.slane %v177_v10, 1 }
  0xd5   :  { %v165_v16 = vadd.f32 %v164_v11, %v163_v9 }
  0xd6   :  { %v179_v17 = vadd.f32 %v178_v14, %v177_v10 }
 0x100   :  { %s358_s1 = spop %357 }
 0x101   :  { %s593_s6 = smul.f32 0.001953125, %s358_s1 }
 0x103   :  { %s97_s7 = smul.f32 %s593_s6, %s593_s6 }
 0x104   :  { %s360_s8 = spop %359 }
 0x105   :  { %s96_s9 = smul.f32 0.001953125, %s360_s8 }
 0x107   :  { %s98_s10 = ssub.f32 %s96_s9, %s97_s7  ;;  %s620_s7 = sld [smem:[#allocation9 + $0x2]] }
 0x108   :  { %s625_s9 = sld [smem:[#allocation9 + $0x1]] }
 0x109   :  { %s99_s12 = smax.f32 %s469_s11, %s98_s10  ;;  %s629_s10 = sld [smem:[#allocation7 + $0x1]] }
 0x10a   :  { %s101_s13 = sadd.f32 1e-05, %s99_s12 }
 0x10c   :  { %v102_v51 = vstv %s101_s13  ;;  %s334_s13 = sld [smem:[#allocation6 + $0x1]] }
 0x10d   :  { %383 = vrsqrt.f32 %v102_v51  ;;  %v355_v51 = vld [vmem:[%s754_s4 + $0x4] sm:$0x3] }
 0x117   :  { %v384_v57 = vpop.eup %383 }
 0x118   :  { %361 = vpush %v384_v57 }
 0x119   :  { %363 = vpush %v122_v58 }
 0x11a   :  { %365 = vpush %v136_v59 }
 0x149   :  { %s598_s0 = spop %361 }
 0x14a   :  { %s364_s14 = spop %363  ;;  %s606_s22 = smul.f32 %s598_s0, %s100_s20 }
 0x14b   :  { %s600_s15 = smul.f32 0.001953125, %s364_s14  ;;  %s366_s16 = spop %365 }
 0x14c   :  { %s139_s18 = smul.f32 0.001953125, %s366_s16  ;;  %s636_s14 = sld [smem:[#allocation7 + $0x101]] }
 0x14d   :  { %s140_s17 = smul.f32 %s600_s15, %s600_s15 }
 0x14e   :  { %s107_s26 = smul.f32 %s606_s22, %s593_s6 }
 0x14f   :  { %s141_s3 = ssub.f32 %s139_s18, %s140_s17  ;;  %s623_s8 = smul.f32 %s197_s27, %s606_s22 }
 0x150   :  { %s618_s1 = ssub.f32 %s106_s23, %s107_s26  ;;  %s236_s6 = smul.f32 %s608_s24, %s606_s22 }
 0x151   :  { %s142_s19 = smax.f32 %s469_s11, %s141_s3  ;;  %s277_s12 = smul.f32 %s610_s25, %s606_s22  ;;  %v201_v18 = vstv %s623_s8 }
 0x152   :  { %s144_s2 = sadd.f32 1e-05, %s142_s19  ;;  %s634_s0 = smul.f32 %s197_s27, %s618_s1  ;;  %v237_v21 = vstv %s236_s6  ;;  %v202_v24 = vmul.f32 %v201_v18, %v536_v0  ;;  %v203_v0 = vmul.f32 %v201_v18, %v541_v1 }
 0x153   :  { %s232_s16 = smul.f32 %s608_s24, %s618_s1  ;;  %s241_s17 = sadd.f32 1.0, %s614_s28  ;;  %v278_v23 = vstv %s277_s12  ;;  %v238_v28 = vmul.f32 %v237_v21, %v234_v19  ;;  %v239_v29 = vmul.f32 %v237_v21, %v235_v20 }
 0x154   :  { %v145_v5 = vstv %s144_s2  ;;  %s273_s18 = smul.f32 %s610_s25, %s618_s1  ;;  %s199_s25 = sadd.f32 %s634_s0, %s616_s29  ;;  %v279_v1 = vmul.f32 %v278_v23, %v275_v22  ;;  %v280_v36 = vmul.f32 %v278_v23, %v276_v25 }
 0x155   :  { %385 = vrsqrt.f32 %v145_v5 }
 0x156   :  { %s274_s8 = sadd.f32 %s620_s7, %s273_s18 }
 0x15f   :  { %v386_v15 = vpop.eup %385 }
 0x160   :  { %367 = vpush %v386_v15 }
 0x161   :  { %369 = vpush %v165_v16 }
 0x162   :  { %371 = vpush %v179_v17 }
 0x191   :  { %s368_s3 = spop %367 }
 0x192   :  { %s643_s19 = smul.f32 %s368_s3, %s333_s30  ;;  %s370_s2 = spop %369 }
 0x193   :  { %s646_s20 = smul.f32 0.001953125, %s370_s2  ;;  %s714_s2 = sld [smem:[#allocation7 + $0x82]] }
 0x194   :  { %s150_s24 = smul.f32 %s643_s19, %s600_s15  ;;  %s338_s15 = sld [smem:[#allocation6 + $0x2]] }
 0x195   :  { %s208_s1 = smul.f32 %s629_s10, %s643_s19 }
 0x196   :  { %s667_s6 = ssub.f32 %s334_s13, %s150_s24  ;;  %s246_s12 = smul.f32 %s241_s17, %s643_s19 }
 0x197   :  { %v209_v30 = vstv %s208_s1  ;;  %s680_s13 = sadd.f32 %s625_s9, %s232_s16  ;;  %s287_s30 = smul.f32 %s636_s14, %s643_s19 }
 0x198   :  { %s206_s3 = smul.f32 %s629_s10, %s667_s6  ;;  %v210_v33 = vmul.f32 %v554_v6, %v209_v30  ;;  %v211_v34 = vmul.f32 %v559_v7, %v209_v30  ;;  %v247_v35 = vstv %s246_s12  ;;  %s372_s16 = spop %371 }
 0x199   :  { %s698_s9 = smul.f32 %s241_s17, %s667_s6  ;;  %v248_v37 = vmul.f32 %v344_v26, %v247_v35  ;;  %v249_v38 = vmul.f32 %v345_v27, %v247_v35  ;;  %v288_v39 = vstv %s287_s30 }
 0x19a   :  { %s703_s7 = sadd.f32 %s206_s3, %s199_s25  ;;  %v212_v40 = vadd.f32 %v210_v33, %v202_v24  ;;  %v213_v41 = vadd.f32 %v211_v34, %v203_v0  ;;  %s283_s10 = smul.f32 %s636_s14, %s667_s6  ;;  %v289_v6 = vmul.f32 %v352_v31, %v288_v39  ;;  %v290_v42 = vmul.f32 %v353_v32, %v288_v39 }
 0x19b   :  { %s243_s18 = sadd.f32 %s698_s9, %s680_s13  ;;  %v250_v7 = vadd.f32 %v248_v37, %v238_v28  ;;  %v251_v43 = vadd.f32 %v249_v38, %v239_v29  ;;  %s183_s28 = smul.f32 %s646_s20, %s646_s20 }
 0x19c   :  { %v291_v44 = vadd.f32 %v289_v6, %v279_v1  ;;  %v292_v45 = vadd.f32 %v290_v42, %v280_v36  ;;  %s182_s17 = smul.f32 0.001953125, %s372_s16  ;;  %s711_s19 = sadd.f32 %s283_s10, %s274_s8 }
 0x19d   :  { %s337_s14 = sld [smem:[#allocation2 + $0x2]] }
 0x19e   :  { %s184_s1 = ssub.f32 %s182_s17, %s183_s28  ;;  %s354_s25 = sld [smem:[#allocation7 + $0x102]] }
 0x19f   :  { %s340_s6 = sld [smem:[#allocation7 + $0x2]] }
 0x1a0   :  { %s185_s29 = smax.f32 %s469_s11, %s184_s1 }
 0x1a1   :  { %s187_s0 = sadd.f32 1e-05, %s185_s29 }
 0x1a3   :  { %v188_v46 = vstv %s187_s0 }
 0x1a4   :  { %387 = vrsqrt.f32 %v188_v46  ;;  %s294_s12 = sadd.f32 1.0, %s354_s25 }
 0x1ae   :  { %v388_v47 = vpop.eup %387 }
 0x1af   :  { %373 = vpush %v388_v47 }
 0x1e0   :  { %s374_s21 = spop %373 }
 0x1e1   :  { %s191_s22 = smul.f32 %s374_s21, %s337_s14 }
 0x1e3   :  { %s193_s23 = smul.f32 %s191_s22, %s646_s20 }
 0x1e4   :  { %s218_s26 = smul.f32 %s340_s6, %s191_s22 }
 0x1e5   :  { %s194_s24 = ssub.f32 %s338_s15, %s193_s23  ;;  %s258_s3 = smul.f32 %s714_s2, %s191_s22 }
 0x1e6   :  { %v219_v50 = vstv %s218_s26  ;;  %s299_s20 = smul.f32 %s294_s12, %s191_s22 }
 0x1e7   :  { %s216_s1 = smul.f32 %s340_s6, %s194_s24  ;;  %v220_v53 = vmul.f32 %v570_v12, %v219_v50  ;;  %v221_v54 = vmul.f32 %v575_v13, %v219_v50  ;;  %v259_v55 = vstv %s258_s3  ;;  %s470_s6 = smov [#allocation11]  }
 0x1e8   :  { %s254_s29 = smul.f32 %s714_s2, %s194_s24  ;;  %v260_v56 = vmul.f32 %v347_v48, %v259_v55  ;;  %v261_v57 = vmul.f32 %v348_v49, %v259_v55  ;;  %v300_v58 = vstv %s299_s20  ;;  %s316_s15 = sshll.u32 %s470_s6, 4  ;;  %s317_s15 = int_to_ptr.vmem [resolvable:$true] %s316_s15 }
 0x1e9   :  { %s217_s0 = sadd.f32 %s216_s1, %s703_s7  ;;  %s295_s14 = smul.f32 %s294_s12, %s194_s24  ;;  %v301_v59 = vmul.f32 %v355_v51, %v300_v58  ;;  %v302_v60 = vmul.f32 %v356_v52, %v300_v58  ;;  %v222_v61 = vadd.f32 %v220_v53, %v212_v40  ;;  %v223_v62 = vadd.f32 %v221_v54, %v213_v41 }
 0x1ea   :  { %s255_s4 = sadd.f32 %s254_s29, %s243_s18  ;;  %v262_v2 = vadd.f32 %v260_v56, %v250_v7  ;;  %v263_v3 = vadd.f32 %v261_v57, %v251_v43  ;;  %s433_s13 = scalar_lea.vmem %s317_s15, 192 }
 0x1eb   :  { %v224_v63 = vstv %s217_s0  ;;  %s296_s25 = sadd.f32 %s295_s14, %s711_s19  ;;  %v303_v12 = vadd.f32 %v301_v59, %v291_v44  ;;  %v304_v8 = vadd.f32 %v302_v60, %v292_v45  ;;  %p434_p2 = scmp.ne.s32.totalorder %s317_s15, %s433_s13 }
 0x1ec   :  { %v225_v13 = vadd.f32 %v224_v63, %v222_v61  ;;  %v226_v4 = vadd.f32 %v224_v63, %v223_v62  ;;  %v264_v5 = vstv %s255_s4  ;;  %p438_p3 = scmp.lt.s32.totalorder %s317_s15, %s317_s15  ;;  %p439_p4 = scmp.lt.s32.totalorder %s433_s13, %s433_s13 }
 0x1ed   :  { %v265_v9 = vadd.f32 %v264_v5, %v262_v2  ;;  %v266_v10 = vadd.f32 %v264_v5, %v263_v3  ;;  %v305_v11 = vstv %s296_s25 }
 0x1ee   :  { %227 = vst [vmem:[#allocation11] sm:$0x3] %v225_v13  ;;  %228 = vst [vmem:[#allocation11 + $0x6] sm:$0x3] %v226_v4  ;;  %v306_v14 = vadd.f32 %v305_v11, %v303_v12  ;;  %v307_v15 = vadd.f32 %v305_v11, %v304_v8  ;;  %p440_p5 = por %p439_p4, %p438_p3 }
 0x1ef   :  { %268 = vst [vmem:[#allocation11 + $0x2] sm:$0x3] %v265_v9  ;;  %269 = vst [vmem:[#allocation11 + $0x8] sm:$0x3] %v266_v10 }
 0x1f0   :  { %309 = vst [vmem:[#allocation11 + $0x4] sm:$0x3] %v306_v14  ;;  %310 = vst [vmem:[#allocation11 + $0xa] sm:$0x3] %v307_v15  ;;  %p441_p6 = pnand %p440_p5, %p434_p2 }
 0x1f2   :  { %444 = shalt.err (!%p441_p6)
}
 0x1f3   :  { %s445_s18 = scalar_lea.hbm %s755_s5, 192 }
 0x1f4   :  { %p446_p7 = scmp.ne.s32.totalorder %s755_s5, %s445_s18  ;;  %p449_p8 = scmp.lt.u32.totalorder %s445_s18, %s755_s5 }
 0x1f6   :  { %p451_p9 = pnand %p449_p8, %p446_p7 }
 0x1f8   :  { %454 = shalt.err (!%p451_p9)
}
 0x1f9   :  { %s471_s12 = smov 32   ;;  %s472_s23 = smov 2  }
 0x1fa   :  { %322 = dma.vmem_to_hbm [thread:$0]  %s317_s15, 192, %s755_s5, [#allocation3], %s471_s12, %s471_s12, %s472_s23  }
 0x1fb   :  { %463 = dma.done.wait [#allocation3], 192  }
 0x1fc   :  { %464 = vsyncadd [#allocation3], 4294967104 }
 0x1fd   :  { %326 = vsyncpa [#allocation3], 1 }
 0x1fe   :  { %327 = vsyncpa [#allocation4], 1 }
 0x1ff   :  { %328 = vsyncpa [#allocation8], 1 }
 0x200   :  { %329 = vsyncpa [#allocation5], 1 }
 0x201   :  { %330 = vsyncpa [#allocation10], 1 }

</bundles_post_ra>
